<compile_context>
chip_gen: v7x
topology: tpu7x:2x2x1
jax: 0.10.0
libtpu: 0.0.40
codegen_flags: <defaults>
</compile_context>

<pallas_src>
import functools
import math

import jax
import jax.numpy as jnp
from jax import lax
from jax.experimental import pallas as pl
from jax.experimental.pallas import tpu as pltpu

LN_EPS = 1e-5  # PyTorch nn.LayerNorm default


def _layer_norm(y, gamma, beta):
    # f32 elementwise math (v5e VPU/EUP have no bf16); biased variance like PyTorch.
    mean = jnp.mean(y, axis=-1, keepdims=True)
    var = jnp.mean((y - mean) ** 2, axis=-1, keepdims=True)
    return (y - mean) * lax.rsqrt(var + LN_EPS) * gamma + beta


# ---------------------------------------------------------------------------
# Fused MHA kernel: one grid step == one (batch, seq_q tile).
#   * Q/K/V/O projections: full-width [TQ|Sk, D] x [D, D] bf16 MXU matmuls.
#   * Attention matmuls (QK^T, attn@V) also use bf16 operands, f32 accumulate.
#   * Per-head contexts land in a VMEM scratch slab at static lane offsets.
#   * Softmax / LayerNorm math stays f32; softmax divide uses EUP reciprocal.
# ---------------------------------------------------------------------------
def _mha_kernel(xq_ref, xk_ref, xv_ref, mask_ref,
                wq_ref, wk_ref, wv_ref, wo_ref, g_ref, b_ref,
                out_ref, ctx_ref, *, n_head):
    x_q = xq_ref[0]                       # (TQ, D) f32 — residual stays f32
    x_k = xk_ref[0]                       # (Sk, D) bf16
    x_v = xv_ref[0]                       # (Sk, D) bf16
    masked = mask_ref[0] != 0             # (TQ, Sk) bool (int8 in HBM)

    d_model = x_q.shape[-1]
    d_k = d_model // n_head
    scale = 1.0 / math.sqrt(d_k)

    # --- fused full-width projections: bf16 operands, f32 accumulation ---
    q = jnp.dot(x_q.astype(jnp.bfloat16), wq_ref[...],
                preferred_element_type=jnp.float32)            # (TQ, D)
    k = jnp.dot(x_k, wk_ref[...], preferred_element_type=jnp.float32)  # (Sk, D)
    v = jnp.dot(x_v, wv_ref[...], preferred_element_type=jnp.float32)  # (Sk, D)

    # bf16 copies feed the attention matmuls at full MXU rate.
    q_bf = q.astype(jnp.bfloat16)
    k_bf = k.astype(jnp.bfloat16)
    v_bf = v.astype(jnp.bfloat16)

    # --- per-head attention; contexts written into the ctx scratch slab ---
    # (static unroll; lane slices are relayout-free whenever d_k is a multiple
    #  of 128, which holds for realistic d_model / n_head).
    for h in range(n_head):
        lo, hi = h * d_k, (h + 1) * d_k
        s = lax.dot_general(q_bf[:, lo:hi], k_bf[:, lo:hi],
                            (((1,), (1,)), ((), ())),
                            preferred_element_type=jnp.float32) * scale  # (TQ, Sk)
        s = jnp.where(masked, -1e9, s)                         # masked_fill_
        s = s - jnp.max(s, axis=-1, keepdims=True)
        e = jnp.exp(s)
        inv = pl.reciprocal(jnp.sum(e, axis=-1, keepdims=True), approx=True)
        attn = (e * inv).astype(jnp.bfloat16)
        ctx_ref[:, lo:hi] = jnp.dot(attn, v_bf[:, lo:hi],
                                    preferred_element_type=jnp.float32)

    # --- single full-width output projection + residual + LayerNorm ---
    o = jnp.dot(ctx_ref[...].astype(jnp.bfloat16), wo_ref[...],
                preferred_element_type=jnp.float32)            # (TQ, D)
    y = o + x_q
    out_ref[0] = _layer_norm(y, g_ref[0], b_ref[0]).astype(out_ref.dtype)


def mha_layer(x_q, x_k, x_v, mask, wq, wk, wv, wo, gamma, beta, n_head, *,
              q_tile=256):
    B, Sq, D = x_q.shape
    Sk = x_k.shape[1]
    assert D % n_head == 0, "d_model must be divisible by n_head"
    d_k = D // n_head

    # seq_q tile: feed the MXU 256 rows when Sq allows; otherwise the full
    # (small) sequence.  TQ is either a multiple of 8 or the full dim, so the
    # (8,128) block-shape rule holds.
    TQ = Sq if Sq <= q_tile else q_tile
    n_q = pl.cdiv(Sq, TQ)

    # Host-side prep: bf16 weights and K/V activations (half the DMA bytes,
    # full MXU rate); int8 mask (quarter the bytes).  x_q stays f32 for the
    # residual / LayerNorm path.
    wq_bf = wq.astype(jnp.bfloat16)
    wk_bf = wk.astype(jnp.bfloat16)
    wv_bf = wv.astype(jnp.bfloat16)
    wo_bf = wo.astype(jnp.bfloat16)
    xk_bf = x_k.astype(jnp.bfloat16)
    xv_bf = x_v.astype(jnp.bfloat16)
    mask_i8 = (mask != 0).astype(jnp.int8)

    # Explicit VMEM budget: double-buffered activation blocks, single-buffered
    # bf16 weights, f32 intermediates, plus headroom; clamped so it still fits
    # v7x's 64 MiB physical VMEM at these tilings.
    block_bytes = (2 * TQ * D * 4            # x_q tile (f32, 2 bufs)
                   + 2 * 2 * Sk * D * 2      # x_k, x_v (bf16, 2 bufs each)
                   + 2 * TQ * Sk             # mask (int8, 2 bufs)
                   + 4 * D * D * 2           # weights (bf16, single-buffered)
                   + 2 * 2 * D * 4           # gamma, beta (2 bufs)
                   + 2 * TQ * D * 4          # out tile (2 bufs)
                   + TQ * D * 4)             # ctx scratch slab
    interm_bytes = (3 * (TQ + 2 * Sk) * D + 2 * TQ * Sk + 4 * TQ * D) * 4
    vmem_limit = int(min(max(2 * (block_bytes + interm_bytes), 32 << 20),
                         96 << 20))

    flops = 2 * B * (Sq * D * D              # Q projection
                     + 2 * Sk * D * D        # K, V projections
                     + Sq * D * D            # output projection
                     + 2 * n_head * Sq * Sk * d_k)  # scores + context
    transcendentals = B * (n_head * Sq * Sk + n_head * Sq + Sq)  # exp, recip, rsqrt
    bytes_accessed = (4 * (x_q.size + B * Sq * D)
                      + 2 * (x_k.size + x_v.size)
                      + mask_i8.size
                      + 2 * (wq.size + wk.size + wv.size + wo.size)
                      + 4 * (gamma.size + beta.size))

    def w_spec():
        # Grid-invariant weights: constant index_map avoids re-DMA; Buffered(1)
        # avoids allocating a useless second pipeline buffer per weight.
        return pl.BlockSpec((D, D), lambda b, qi: (0, 0),
                            pipeline_mode=pl.Buffered(1))

    kernel = functools.partial(_mha_kernel, n_head=n_head)
    return pl.pallas_call(
        kernel,
        out_shape=jax.ShapeDtypeStruct((B, Sq, D), x_q.dtype),
        grid=(B, n_q),
        in_specs=[
            pl.BlockSpec((1, TQ, D), lambda b, qi: (b, qi, 0)),   # input_Q (f32)
            pl.BlockSpec((1, Sk, D), lambda b, qi: (b, 0, 0)),    # input_K (bf16)
            pl.BlockSpec((1, Sk, D), lambda b, qi: (b, 0, 0)),    # input_V (bf16)
            pl.BlockSpec((1, TQ, Sk), lambda b, qi: (b, qi, 0)),  # mask (int8)
            w_spec(), w_spec(), w_spec(), w_spec(),               # W_Q/K/V/O (bf16)
            pl.BlockSpec((1, D), lambda b, qi: (0, 0)),           # LN gamma
            pl.BlockSpec((1, D), lambda b, qi: (0, 0)),           # LN beta
        ],
        out_specs=pl.BlockSpec((1, TQ, D), lambda b, qi: (b, qi, 0)),
        scratch_shapes=[pltpu.VMEM((TQ, D), jnp.float32)],        # head-concat slab
        compiler_params=pltpu.CompilerParams(
            dimension_semantics=("parallel", "parallel"),         # both axes independent
            vmem_limit_bytes=vmem_limit),
        cost_estimate=pl.CostEstimate(
            flops=flops, transcendentals=transcendentals,
            bytes_accessed=bytes_accessed),
    )(x_q, xk_bf, xv_bf, mask_i8, wq_bf, wk_bf, wv_bf, wo_bf, gamma, beta)


# ---------------------------------------------------------------------------
# Parameter construction (PyTorch-style init; weights stored as [in, out]).
# nn.Dropout in the PyTorch module is never applied in forward(), so it is
# intentionally absent here (inference semantics are identical).
# ---------------------------------------------------------------------------
def make_mha_params(key, d_model):
    ks = jax.random.split(key, 6)
    sc = 1.0 / math.sqrt(d_model)
    wq = jax.random.uniform(ks[0], (d_model, d_model), jnp.float32, -sc, sc)
    wk = jax.random.uniform(ks[1], (d_model, d_model), jnp.float32, -sc, sc)
    wv = jax.random.uniform(ks[2], (d_model, d_model), jnp.float32, -sc, sc)
    wo = jax.random.uniform(ks[3], (d_model, d_model), jnp.float32, -sc, sc)
    gamma = 1.0 + 0.1 * jax.random.normal(ks[4], (1, d_model), jnp.float32)
    beta = 0.1 * jax.random.normal(ks[5], (1, d_model), jnp.float32)
    return dict(wq=wq, wk=wk, wv=wv, wo=wo, gamma=gamma, beta=beta)


# -------------------------- pure-JAX f32 reference --------------------------
def mha_ref(x_q, x_k, x_v, mask, p, n_head):
    B, Sq, D = x_q.shape
    d_k = D // n_head
    Q = (x_q @ p["wq"]).reshape(B, Sq, n_head, d_k).transpose(0, 2, 1, 3)
    K = (x_k @ p["wk"]).reshape(B, -1, n_head, d_k).transpose(0, 2, 1, 3)
    V = (x_v @ p["wv"]).reshape(B, -1, n_head, d_k).transpose(0, 2, 1, 3)
    s = jnp.einsum("bhqd,bhkd->bhqk", Q, K) / math.sqrt(d_k)
    s = jnp.where((mask != 0.0)[:, None], -1e9, s)
    a = jax.nn.softmax(s, axis=-1)
    o = jnp.einsum("bhqk,bhkd->bhqd", a, V).transpose(0, 2, 1, 3).reshape(B, Sq, D)
    return _layer_norm(o @ p["wo"] + x_q, p["gamma"][0], p["beta"][0])


if __name__ == "__main__":
    d_model, n_head = 32, 4
    batch, seq_q, seq_k = 2, 8, 16

    root = jax.random.PRNGKey(0)
    kq, kk, kv, kmask, kp = jax.random.split(root, 5)

    input_Q = jax.random.normal(kq, (batch, seq_q, d_model), jnp.float32)
    input_K = jax.random.normal(kk, (batch, seq_k, d_model), jnp.float32)
    input_V = jax.random.normal(kv, (batch, seq_k, d_model), jnp.float32)
    mask = jax.random.bernoulli(
        kmask, 0.2, (batch, seq_q, seq_k)).astype(jnp.float32)  # nonzero == masked

    p = make_mha_params(kp, d_model)

    out = mha_layer(input_Q, input_K, input_V, mask,
                    p["wq"], p["wk"], p["wv"], p["wo"],
                    p["gamma"], p["beta"], n_head)
    out = jax.block_until_ready(out)

    ref = mha_ref(input_Q, input_K, input_V, mask, p, n_head)
    assert out.shape == (batch, seq_q, d_model)
    # tolerance covers bf16 operands on every matmul + approx reciprocal
    # (accumulation, softmax and LayerNorm stay f32)
    assert jnp.allclose(out, ref, rtol=2e-2, atol=2e-2), "mismatch vs reference"
    print("KERNEL_OK")
</pallas_src>

<mosaic_0001>
module attributes {stable_mosaic.version = 11 : i64} {
  func.func @_mha_kernel(%arg0: i32, %arg1: i32, %arg2: memref<1x8x32xf32, #tpu.memory_space<vmem>>, %arg3: memref<1x16x32xbf16, #tpu.memory_space<vmem>>, %arg4: memref<1x16x32xbf16, #tpu.memory_space<vmem>>, %arg5: memref<1x8x16xi8, #tpu.memory_space<vmem>>, %arg6: memref<32x32xbf16, #tpu.memory_space<vmem>>, %arg7: memref<32x32xbf16, #tpu.memory_space<vmem>>, %arg8: memref<32x32xbf16, #tpu.memory_space<vmem>>, %arg9: memref<32x32xbf16, #tpu.memory_space<vmem>>, %arg10: memref<1x32xf32, #tpu.memory_space<vmem>>, %arg11: memref<1x32xf32, #tpu.memory_space<vmem>>, %arg12: memref<1x8x32xf32, #tpu.memory_space<vmem>>, %arg13: memref<8x32xf32, #tpu.memory_space<vmem>>) attributes {dimension_semantics = [#tpu.dimension_semantics<parallel>, #tpu.dimension_semantics<parallel>], iteration_bounds = array<i64: 2, 1>, scalar_prefetch = 0 : i64, scratch_operands = 1 : i64, tpu.core_type = #tpu.core_type<tc>, window_params = [{transform_indices = @transform_0, window_bounds = array<i64: 1, 8, 32>}, {transform_indices = @transform_1, window_bounds = array<i64: 1, 16, 32>}, {transform_indices = @transform_2, window_bounds = array<i64: 1, 16, 32>}, {transform_indices = @transform_3, window_bounds = array<i64: 1, 8, 16>}, {pipeline_mode = #tpu.pipeline_mode<synchronous>, transform_indices = @transform_4, window_bounds = array<i64: 32, 32>}, {pipeline_mode = #tpu.pipeline_mode<synchronous>, transform_indices = @transform_5, window_bounds = array<i64: 32, 32>}, {pipeline_mode = #tpu.pipeline_mode<synchronous>, transform_indices = @transform_6, window_bounds = array<i64: 32, 32>}, {pipeline_mode = #tpu.pipeline_mode<synchronous>, transform_indices = @transform_7, window_bounds = array<i64: 32, 32>}, {pipeline_mode = #tpu.pipeline_mode<synchronous>, transform_indices = @transform_8, window_bounds = array<i64: 1, 32>}, {pipeline_mode = #tpu.pipeline_mode<synchronous>, transform_indices = @transform_9, window_bounds = array<i64: 1, 32>}, {transform_indices = @transform_10, window_bounds = array<i64: 1, 8, 32>}]} {
    %c0 = arith.constant 0 : index
    %c0_0 = arith.constant 0 : index
    %c0_1 = arith.constant 0 : index
    %0 = vector.load %arg2[%c0, %c0_0, %c0_1] : memref<1x8x32xf32, #tpu.memory_space<vmem>>, vector<1x8x32xf32>
    %1 = vector.shape_cast %0 : vector<1x8x32xf32> to vector<8x32xf32>
    %c0_2 = arith.constant 0 : index
    %c0_3 = arith.constant 0 : index
    %c0_4 = arith.constant 0 : index
    %2 = vector.load %arg3[%c0_2, %c0_3, %c0_4] : memref<1x16x32xbf16, #tpu.memory_space<vmem>>, vector<1x16x32xbf16>
    %3 = vector.shape_cast %2 : vector<1x16x32xbf16> to vector<16x32xbf16>
    %c0_5 = arith.constant 0 : index
    %c0_6 = arith.constant 0 : index
    %c0_7 = arith.constant 0 : index
    %4 = vector.load %arg4[%c0_5, %c0_6, %c0_7] : memref<1x16x32xbf16, #tpu.memory_space<vmem>>, vector<1x16x32xbf16>
    %5 = vector.shape_cast %4 : vector<1x16x32xbf16> to vector<16x32xbf16>
    %c0_8 = arith.constant 0 : index
    %c0_9 = arith.constant 0 : index
    %c0_10 = arith.constant 0 : index
    %6 = vector.load %arg5[%c0_8, %c0_9, %c0_10] : memref<1x8x16xi8, #tpu.memory_space<vmem>>, vector<1x8x16xi8>
    %7 = vector.shape_cast %6 : vector<1x8x16xi8> to vector<8x16xi8>
    %c0_i8 = arith.constant 0 : i8
    %8 = vector.broadcast %c0_i8 : i8 to vector<8x16xi8>
    %9 = arith.cmpi ne, %7, %8 : vector<8x16xi8>
    %10 = arith.truncf %1 : vector<8x32xf32> to vector<8x32xbf16>
    %c0_11 = arith.constant 0 : index
    %c0_12 = arith.constant 0 : index
    %11 = vector.load %arg6[%c0_11, %c0_12] : memref<32x32xbf16, #tpu.memory_space<vmem>>, vector<32x32xbf16>
    %cst = arith.constant dense<0.000000e+00> : vector<8x32xf32>
    %12 = tpu.matmul %10, %11, %cst {dimension_numbers = #tpu.dot_dimension_numbers<[1], [0], [0], [1], [0, 0, 1, 1], [], []>} : vector<8x32xbf16>, vector<32x32xbf16>, vector<8x32xf32> -> vector<8x32xf32>
    %c0_13 = arith.constant 0 : index
    %c0_14 = arith.constant 0 : index
    %13 = vector.load %arg7[%c0_13, %c0_14] : memref<32x32xbf16, #tpu.memory_space<vmem>>, vector<32x32xbf16>
    %cst_15 = arith.constant dense<0.000000e+00> : vector<16x32xf32>
    %14 = tpu.matmul %3, %13, %cst_15 {dimension_numbers = #tpu.dot_dimension_numbers<[1], [0], [0], [1], [0, 0, 1, 1], [], []>} : vector<16x32xbf16>, vector<32x32xbf16>, vector<16x32xf32> -> vector<16x32xf32>
    %c0_16 = arith.constant 0 : index
    %c0_17 = arith.constant 0 : index
    %15 = vector.load %arg8[%c0_16, %c0_17] : memref<32x32xbf16, #tpu.memory_space<vmem>>, vector<32x32xbf16>
    %cst_18 = arith.constant dense<0.000000e+00> : vector<16x32xf32>
    %16 = tpu.matmul %5, %15, %cst_18 {dimension_numbers = #tpu.dot_dimension_numbers<[1], [0], [0], [1], [0, 0, 1, 1], [], []>} : vector<16x32xbf16>, vector<32x32xbf16>, vector<16x32xf32> -> vector<16x32xf32>
    %17 = arith.truncf %12 : vector<8x32xf32> to vector<8x32xbf16>
    %18 = arith.truncf %14 : vector<16x32xf32> to vector<16x32xbf16>
    %19 = arith.truncf %16 : vector<16x32xf32> to vector<16x32xbf16>
    %20 = vector.extract_strided_slice %17 {offsets = [0, 0], sizes = [8, 8], strides = [1, 1]} : vector<8x32xbf16> to vector<8x8xbf16>
    %21 = vector.extract_strided_slice %18 {offsets = [0, 0], sizes = [16, 8], strides = [1, 1]} : vector<16x32xbf16> to vector<16x8xbf16>
    %cst_19 = arith.constant dense<0.000000e+00> : vector<8x16xf32>
    %22 = tpu.matmul %20, %21, %cst_19 {dimension_numbers = #tpu.dot_dimension_numbers<[1], [1], [0], [0], [0, 0, 1, 0], [], []>} : vector<8x8xbf16>, vector<16x8xbf16>, vector<8x16xf32> -> vector<8x16xf32>
    %cst_20 = arith.constant 0.353553385 : f32
    %23 = vector.broadcast %cst_20 : f32 to vector<8x16xf32>
    %24 = arith.mulf %22, %23 : vector<8x16xf32>
    %cst_21 = arith.constant -1.000000e+09 : f32
    %25 = vector.broadcast %cst_21 : f32 to vector<8x16xf32>
    %26 = arith.select %9, %25, %24 : vector<8x16xi1>, vector<8x16xf32>
    %cst_22 = arith.constant dense<0xFF800000> : vector<8xf32>
    %27 = vector.multi_reduction <maximumf>, %26, %cst_22 [1] : vector<8x16xf32> to vector<8xf32>
    %28 = vector.shape_cast %27 : vector<8xf32> to vector<8x1xf32>
    %29 = vector.broadcast %28 : vector<8x1xf32> to vector<8x16xf32>
    %30 = arith.subf %26, %29 : vector<8x16xf32>
    %31 = math.exp %30 : vector<8x16xf32>
    %cst_23 = arith.constant dense<0.000000e+00> : vector<8xf32>
    %32 = vector.multi_reduction <add>, %31, %cst_23 [1] : vector<8x16xf32> to vector<8xf32>
    %33 = vector.shape_cast %32 : vector<8xf32> to vector<8x1xf32>
    %34 = tpu.reciprocal %33 {approx = true} : vector<8x1xf32> -> vector<8x1xf32>
    %35 = vector.broadcast %34 : vector<8x1xf32> to vector<8x16xf32>
    %36 = arith.mulf %31, %35 : vector<8x16xf32>
    %37 = arith.truncf %36 : vector<8x16xf32> to vector<8x16xbf16>
    %38 = vector.extract_strided_slice %19 {offsets = [0, 0], sizes = [16, 8], strides = [1, 1]} : vector<16x32xbf16> to vector<16x8xbf16>
    %cst_24 = arith.constant dense<0.000000e+00> : vector<8x8xf32>
    %39 = tpu.matmul %37, %38, %cst_24 {dimension_numbers = #tpu.dot_dimension_numbers<[1], [0], [0], [1], [0, 0, 1, 1], [], []>} : vector<8x16xbf16>, vector<16x8xbf16>, vector<8x8xf32> -> vector<8x8xf32>
    %c0_25 = arith.constant 0 : index
    %c0_26 = arith.constant 0 : index
    %40 = vector.load %arg13[%c0_25, %c0_26] : memref<8x32xf32, #tpu.memory_space<vmem>>, vector<8x8xf32>
    tpu.vector_store %arg13[%c0_25, %c0_26], %39 {strides = array<i32>} : memref<8x32xf32, #tpu.memory_space<vmem>>, vector<8x8xf32>,
    %41 = vector.extract_strided_slice %17 {offsets = [0, 8], sizes = [8, 8], strides = [1, 1]} : vector<8x32xbf16> to vector<8x8xbf16>
    %42 = vector.extract_strided_slice %18 {offsets = [0, 8], sizes = [16, 8], strides = [1, 1]} : vector<16x32xbf16> to vector<16x8xbf16>
    %cst_27 = arith.constant dense<0.000000e+00> : vector<8x16xf32>
    %43 = tpu.matmul %41, %42, %cst_27 {dimension_numbers = #tpu.dot_dimension_numbers<[1], [1], [0], [0], [0, 0, 1, 0], [], []>} : vector<8x8xbf16>, vector<16x8xbf16>, vector<8x16xf32> -> vector<8x16xf32>
    %cst_28 = arith.constant 0.353553385 : f32
    %44 = vector.broadcast %cst_28 : f32 to vector<8x16xf32>
    %45 = arith.mulf %43, %44 : vector<8x16xf32>
    %cst_29 = arith.constant -1.000000e+09 : f32
    %46 = vector.broadcast %cst_29 : f32 to vector<8x16xf32>
    %47 = arith.select %9, %46, %45 : vector<8x16xi1>, vector<8x16xf32>
    %cst_30 = arith.constant dense<0xFF800000> : vector<8xf32>
    %48 = vector.multi_reduction <maximumf>, %47, %cst_30 [1] : vector<8x16xf32> to vector<8xf32>
    %49 = vector.shape_cast %48 : vector<8xf32> to vector<8x1xf32>
    %50 = vector.broadcast %49 : vector<8x1xf32> to vector<8x16xf32>
    %51 = arith.subf %47, %50 : vector<8x16xf32>
    %52 = math.exp %51 : vector<8x16xf32>
    %cst_31 = arith.constant dense<0.000000e+00> : vector<8xf32>
    %53 = vector.multi_reduction <add>, %52, %cst_31 [1] : vector<8x16xf32> to vector<8xf32>
    %54 = vector.shape_cast %53 : vector<8xf32> to vector<8x1xf32>
    %55 = tpu.reciprocal %54 {approx = true} : vector<8x1xf32> -> vector<8x1xf32>
    %56 = vector.broadcast %55 : vector<8x1xf32> to vector<8x16xf32>
    %57 = arith.mulf %52, %56 : vector<8x16xf32>
    %58 = arith.truncf %57 : vector<8x16xf32> to vector<8x16xbf16>
    %59 = vector.extract_strided_slice %19 {offsets = [0, 8], sizes = [16, 8], strides = [1, 1]} : vector<16x32xbf16> to vector<16x8xbf16>
    %cst_32 = arith.constant dense<0.000000e+00> : vector<8x8xf32>
    %60 = tpu.matmul %58, %59, %cst_32 {dimension_numbers = #tpu.dot_dimension_numbers<[1], [0], [0], [1], [0, 0, 1, 1], [], []>} : vector<8x16xbf16>, vector<16x8xbf16>, vector<8x8xf32> -> vector<8x8xf32>
    %c0_33 = arith.constant 0 : index
    %c8 = arith.constant 8 : index
    %61 = vector.load %arg13[%c0_33, %c8] : memref<8x32xf32, #tpu.memory_space<vmem>>, vector<8x8xf32>
    tpu.vector_store %arg13[%c0_33, %c8], %60 {strides = array<i32>} : memref<8x32xf32, #tpu.memory_space<vmem>>, vector<8x8xf32>,
    %62 = vector.extract_strided_slice %17 {offsets = [0, 16], sizes = [8, 8], strides = [1, 1]} : vector<8x32xbf16> to vector<8x8xbf16>
    %63 = vector.extract_strided_slice %18 {offsets = [0, 16], sizes = [16, 8], strides = [1, 1]} : vector<16x32xbf16> to vector<16x8xbf16>
    %cst_34 = arith.constant dense<0.000000e+00> : vector<8x16xf32>
    %64 = tpu.matmul %62, %63, %cst_34 {dimension_numbers = #tpu.dot_dimension_numbers<[1], [1], [0], [0], [0, 0, 1, 0], [], []>} : vector<8x8xbf16>, vector<16x8xbf16>, vector<8x16xf32> -> vector<8x16xf32>
    %cst_35 = arith.constant 0.353553385 : f32
    %65 = vector.broadcast %cst_35 : f32 to vector<8x16xf32>
    %66 = arith.mulf %64, %65 : vector<8x16xf32>
    %cst_36 = arith.constant -1.000000e+09 : f32
    %67 = vector.broadcast %cst_36 : f32 to vector<8x16xf32>
    %68 = arith.select %9, %67, %66 : vector<8x16xi1>, vector<8x16xf32>
    %cst_37 = arith.constant dense<0xFF800000> : vector<8xf32>
    %69 = vector.multi_reduction <maximumf>, %68, %cst_37 [1] : vector<8x16xf32> to vector<8xf32>
    %70 = vector.shape_cast %69 : vector<8xf32> to vector<8x1xf32>
    %71 = vector.broadcast %70 : vector<8x1xf32> to vector<8x16xf32>
    %72 = arith.subf %68, %71 : vector<8x16xf32>
    %73 = math.exp %72 : vector<8x16xf32>
    %cst_38 = arith.constant dense<0.000000e+00> : vector<8xf32>
    %74 = vector.multi_reduction <add>, %73, %cst_38 [1] : vector<8x16xf32> to vector<8xf32>
    %75 = vector.shape_cast %74 : vector<8xf32> to vector<8x1xf32>
    %76 = tpu.reciprocal %75 {approx = true} : vector<8x1xf32> -> vector<8x1xf32>
    %77 = vector.broadcast %76 : vector<8x1xf32> to vector<8x16xf32>
    %78 = arith.mulf %73, %77 : vector<8x16xf32>
    %79 = arith.truncf %78 : vector<8x16xf32> to vector<8x16xbf16>
    %80 = vector.extract_strided_slice %19 {offsets = [0, 16], sizes = [16, 8], strides = [1, 1]} : vector<16x32xbf16> to vector<16x8xbf16>
    %cst_39 = arith.constant dense<0.000000e+00> : vector<8x8xf32>
    %81 = tpu.matmul %79, %80, %cst_39 {dimension_numbers = #tpu.dot_dimension_numbers<[1], [0], [0], [1], [0, 0, 1, 1], [], []>} : vector<8x16xbf16>, vector<16x8xbf16>, vector<8x8xf32> -> vector<8x8xf32>
    %c0_40 = arith.constant 0 : index
    %c16 = arith.constant 16 : index
    %82 = vector.load %arg13[%c0_40, %c16] : memref<8x32xf32, #tpu.memory_space<vmem>>, vector<8x8xf32>
    tpu.vector_store %arg13[%c0_40, %c16], %81 {strides = array<i32>} : memref<8x32xf32, #tpu.memory_space<vmem>>, vector<8x8xf32>,
    %83 = vector.extract_strided_slice %17 {offsets = [0, 24], sizes = [8, 8], strides = [1, 1]} : vector<8x32xbf16> to vector<8x8xbf16>
    %84 = vector.extract_strided_slice %18 {offsets = [0, 24], sizes = [16, 8], strides = [1, 1]} : vector<16x32xbf16> to vector<16x8xbf16>
    %cst_41 = arith.constant dense<0.000000e+00> : vector<8x16xf32>
    %85 = tpu.matmul %83, %84, %cst_41 {dimension_numbers = #tpu.dot_dimension_numbers<[1], [1], [0], [0], [0, 0, 1, 0], [], []>} : vector<8x8xbf16>, vector<16x8xbf16>, vector<8x16xf32> -> vector<8x16xf32>
    %cst_42 = arith.constant 0.353553385 : f32
    %86 = vector.broadcast %cst_42 : f32 to vector<8x16xf32>
    %87 = arith.mulf %85, %86 : vector<8x16xf32>
    %cst_43 = arith.constant -1.000000e+09 : f32
    %88 = vector.broadcast %cst_43 : f32 to vector<8x16xf32>
    %89 = arith.select %9, %88, %87 : vector<8x16xi1>, vector<8x16xf32>
    %cst_44 = arith.constant dense<0xFF800000> : vector<8xf32>
    %90 = vector.multi_reduction <maximumf>, %89, %cst_44 [1] : vector<8x16xf32> to vector<8xf32>
    %91 = vector.shape_cast %90 : vector<8xf32> to vector<8x1xf32>
    %92 = vector.broadcast %91 : vector<8x1xf32> to vector<8x16xf32>
    %93 = arith.subf %89, %92 : vector<8x16xf32>
    %94 = math.exp %93 : vector<8x16xf32>
    %cst_45 = arith.constant dense<0.000000e+00> : vector<8xf32>
    %95 = vector.multi_reduction <add>, %94, %cst_45 [1] : vector<8x16xf32> to vector<8xf32>
    %96 = vector.shape_cast %95 : vector<8xf32> to vector<8x1xf32>
    %97 = tpu.reciprocal %96 {approx = true} : vector<8x1xf32> -> vector<8x1xf32>
    %98 = vector.broadcast %97 : vector<8x1xf32> to vector<8x16xf32>
    %99 = arith.mulf %94, %98 : vector<8x16xf32>
    %100 = arith.truncf %99 : vector<8x16xf32> to vector<8x16xbf16>
    %101 = vector.extract_strided_slice %19 {offsets = [0, 24], sizes = [16, 8], strides = [1, 1]} : vector<16x32xbf16> to vector<16x8xbf16>
    %cst_46 = arith.constant dense<0.000000e+00> : vector<8x8xf32>
    %102 = tpu.matmul %100, %101, %cst_46 {dimension_numbers = #tpu.dot_dimension_numbers<[1], [0], [0], [1], [0, 0, 1, 1], [], []>} : vector<8x16xbf16>, vector<16x8xbf16>, vector<8x8xf32> -> vector<8x8xf32>
    %c0_47 = arith.constant 0 : index
    %c24 = arith.constant 24 : index
    %103 = vector.load %arg13[%c0_47, %c24] : memref<8x32xf32, #tpu.memory_space<vmem>>, vector<8x8xf32>
    tpu.vector_store %arg13[%c0_47, %c24], %102 {strides = array<i32>} : memref<8x32xf32, #tpu.memory_space<vmem>>, vector<8x8xf32>,
    %c0_48 = arith.constant 0 : index
    %c0_49 = arith.constant 0 : index
    %104 = vector.load %arg13[%c0_48, %c0_49] : memref<8x32xf32, #tpu.memory_space<vmem>>, vector<8x32xf32>
    %105 = arith.truncf %104 : vector<8x32xf32> to vector<8x32xbf16>
    %c0_50 = arith.constant 0 : index
    %c0_51 = arith.constant 0 : index
    %106 = vector.load %arg9[%c0_50, %c0_51] : memref<32x32xbf16, #tpu.memory_space<vmem>>, vector<32x32xbf16>
    %cst_52 = arith.constant dense<0.000000e+00> : vector<8x32xf32>
    %107 = tpu.matmul %105, %106, %cst_52 {dimension_numbers = #tpu.dot_dimension_numbers<[1], [0], [0], [1], [0, 0, 1, 1], [], []>} : vector<8x32xbf16>, vector<32x32xbf16>, vector<8x32xf32> -> vector<8x32xf32>
    %108 = arith.addf %107, %1 : vector<8x32xf32>
    %c0_53 = arith.constant 0 : index
    %c0_54 = arith.constant 0 : index
    %109 = vector.load %arg10[%c0_53, %c0_54] : memref<1x32xf32, #tpu.memory_space<vmem>>, vector<1x32xf32>
    %110 = vector.shape_cast %109 : vector<1x32xf32> to vector<32xf32>
    %c0_55 = arith.constant 0 : index
    %c0_56 = arith.constant 0 : index
    %111 = vector.load %arg11[%c0_55, %c0_56] : memref<1x32xf32, #tpu.memory_space<vmem>>, vector<1x32xf32>
    %112 = vector.shape_cast %111 : vector<1x32xf32> to vector<32xf32>
    %cst_57 = arith.constant dense<0.000000e+00> : vector<8xf32>
    %113 = vector.multi_reduction <add>, %108, %cst_57 [1] : vector<8x32xf32> to vector<8xf32>
    %114 = vector.shape_cast %113 : vector<8xf32> to vector<8x1xf32>
    %cst_58 = arith.constant 3.200000e+01 : f32
    %115 = vector.broadcast %cst_58 : f32 to vector<8x1xf32>
    %116 = arith.divf %114, %115 : vector<8x1xf32>
    %117 = vector.broadcast %116 : vector<8x1xf32> to vector<8x32xf32>
    %118 = arith.subf %108, %117 : vector<8x32xf32>
    %119 = arith.mulf %118, %118 : vector<8x32xf32>
    %cst_59 = arith.constant dense<0.000000e+00> : vector<8xf32>
    %120 = vector.multi_reduction <add>, %119, %cst_59 [1] : vector<8x32xf32> to vector<8xf32>
    %121 = vector.shape_cast %120 : vector<8xf32> to vector<8x1xf32>
    %cst_60 = arith.constant 3.200000e+01 : f32
    %122 = vector.broadcast %cst_60 : f32 to vector<8x1xf32>
    %123 = arith.divf %121, %122 : vector<8x1xf32>
    %124 = vector.broadcast %116 : vector<8x1xf32> to vector<8x32xf32>
    %125 = arith.subf %108, %124 : vector<8x32xf32>
    %cst_61 = arith.constant 9.99999974E-6 : f32
    %126 = vector.broadcast %cst_61 : f32 to vector<8x1xf32>
    %127 = arith.addf %123, %126 : vector<8x1xf32>
    %128 = math.rsqrt %127 : vector<8x1xf32>
    %129 = vector.broadcast %128 : vector<8x1xf32> to vector<8x32xf32>
    %130 = arith.mulf %125, %129 : vector<8x32xf32>
    %131 = vector.shape_cast %110 : vector<32xf32> to vector<1x32xf32>
    %132 = vector.broadcast %131 : vector<1x32xf32> to vector<8x32xf32>
    %133 = arith.mulf %130, %132 : vector<8x32xf32>
    %134 = vector.shape_cast %112 : vector<32xf32> to vector<1x32xf32>
    %135 = vector.broadcast %134 : vector<1x32xf32> to vector<8x32xf32>
    %136 = arith.addf %133, %135 : vector<8x32xf32>
    %c0_62 = arith.constant 0 : index
    %c0_63 = arith.constant 0 : index
    %c0_64 = arith.constant 0 : index
    %137 = vector.load %arg12[%c0_62, %c0_63, %c0_64] : memref<1x8x32xf32, #tpu.memory_space<vmem>>, vector<1x8x32xf32>
    %138 = vector.shape_cast %137 : vector<1x8x32xf32> to vector<8x32xf32>
    %139 = vector.shape_cast %136 : vector<8x32xf32> to vector<1x8x32xf32>
    tpu.vector_store %arg12[%c0_62, %c0_63, %c0_64], %139 {strides = array<i32>} : memref<1x8x32xf32, #tpu.memory_space<vmem>>, vector<1x8x32xf32>,
    return
  }
  func.func @transform_0(%arg0: i32, %arg1: i32) -> (i32, i32, i32) {
    %c0_i32 = arith.constant 0 : i32
    %c0_i32_0 = arith.constant 0 : i32
    return %arg0, %arg1, %c0_i32 : i32, i32, i32
  }
  func.func @transform_1(%arg0: i32, %arg1: i32) -> (i32, i32, i32) {
    %c0_i32 = arith.constant 0 : i32
    %c0_i32_0 = arith.constant 0 : i32
    %c0_i32_1 = arith.constant 0 : i32
    return %arg0, %c0_i32, %c0_i32_0 : i32, i32, i32
  }
  func.func @transform_2(%arg0: i32, %arg1: i32) -> (i32, i32, i32) {
    %c0_i32 = arith.constant 0 : i32
    %c0_i32_0 = arith.constant 0 : i32
    %c0_i32_1 = arith.constant 0 : i32
    return %arg0, %c0_i32, %c0_i32_0 : i32, i32, i32
  }
  func.func @transform_3(%arg0: i32, %arg1: i32) -> (i32, i32, i32) {
    %c0_i32 = arith.constant 0 : i32
    %c0_i32_0 = arith.constant 0 : i32
    return %arg0, %arg1, %c0_i32 : i32, i32, i32
  }
  func.func @transform_4(%arg0: i32, %arg1: i32) -> (i32, i32) {
    %c0_i32 = arith.constant 0 : i32
    %c0_i32_0 = arith.constant 0 : i32
    %c0_i32_1 = arith.constant 0 : i32
    return %c0_i32, %c0_i32_0 : i32, i32
  }
  func.func @transform_5(%arg0: i32, %arg1: i32) -> (i32, i32) {
    %c0_i32 = arith.constant 0 : i32
    %c0_i32_0 = arith.constant 0 : i32
    %c0_i32_1 = arith.constant 0 : i32
    return %c0_i32, %c0_i32_0 : i32, i32
  }
  func.func @transform_6(%arg0: i32, %arg1: i32) -> (i32, i32) {
    %c0_i32 = arith.constant 0 : i32
    %c0_i32_0 = arith.constant 0 : i32
    %c0_i32_1 = arith.constant 0 : i32
    return %c0_i32, %c0_i32_0 : i32, i32
  }
  func.func @transform_7(%arg0: i32, %arg1: i32) -> (i32, i32) {
    %c0_i32 = arith.constant 0 : i32
    %c0_i32_0 = arith.constant 0 : i32
    %c0_i32_1 = arith.constant 0 : i32
    return %c0_i32, %c0_i32_0 : i32, i32
  }
  func.func @transform_8(%arg0: i32, %arg1: i32) -> (i32, i32) {
    %c0_i32 = arith.constant 0 : i32
    %c0_i32_0 = arith.constant 0 : i32
    %c0_i32_1 = arith.constant 0 : i32
    return %c0_i32, %c0_i32_0 : i32, i32
  }
  func.func @transform_9(%arg0: i32, %arg1: i32) -> (i32, i32) {
    %c0_i32 = arith.constant 0 : i32
    %c0_i32_0 = arith.constant 0 : i32
    %c0_i32_1 = arith.constant 0 : i32
    return %c0_i32, %c0_i32_0 : i32, i32
  }
  func.func @transform_10(%arg0: i32, %arg1: i32) -> (i32, i32, i32) {
    %c0_i32 = arith.constant 0 : i32
    %c0_i32_0 = arith.constant 0 : i32
    return %arg0, %arg1, %c0_i32 : i32, i32, i32
  }
}

</mosaic_0001>

<bundles_post_ra>
// kernel: tpu_custom_call.1
= control target key start
LH: loop header
LB: loop body
LE: loop exit
PB: predicated region body
PF: predicated region fallthrough
CT: control target
= control target key end

     0   :  { %s2706_s0 = inlined_call_operand.hbm [shape: f32[2,8,32], index: 0, kind: input, shape index: {}]   ;;  %s2707_s1 = inlined_call_operand.hbm [shape: bf16[2,16,32], index: 1, kind: input, shape index: {}]   ;;  %s2708_s2 = inlined_call_operand.hbm [shape: bf16[2,16,32], index: 2, kind: input, shape index: {}]   ;;  %s2709_s3 = inlined_call_operand.hbm [shape: s8[2,8,16], index: 3, kind: input, shape index: {}]   ;;  %s2710_s4 = inlined_call_operand.hbm [shape: bf16[32,32], index: 4, kind: input, shape index: {}]   ;;  %s2711_s5 = inlined_call_operand.vmem [shape: bf16[32,32], index: 5, kind: input, shape index: {}]   ;;  %s2712_s6 = inlined_call_operand.hbm [shape: bf16[32,32], index: 6, kind: input, shape index: {}]   ;;  %s2713_s7 = inlined_call_operand.hbm [shape: bf16[32,32], index: 7, kind: input, shape index: {}]   ;;  %s2714_s8 = inlined_call_operand.vmem [shape: f32[1,32], index: 8, kind: input, shape index: {}]   ;;  %s2715_s9 = inlined_call_operand.vmem [shape: f32[1,32], index: 9, kind: input, shape index: {}]   ;;  %s2716_s10 = inlined_call_operand.hbm [shape: f32[2,8,32], index: 10, kind: output, shape index: {}]  }
   0x1   :  { %2740 = sst [smem:[#allocation29_spill]] %s2707_s1 }
   0x2   :  { %2741 = sst [smem:[#allocation30_spill]] %s2710_s4 }
   0x3   :  { %2742 = sst [smem:[#allocation31_spill]] %s2711_s5 }
   0x4   :  { %2743 = sst [smem:[#allocation32_spill]] %s2712_s6 }
   0x5   :  { %2744 = sst [smem:[#allocation33_spill]] %s2714_s8 }
   0x6   :  { %2745 = sst [smem:[#allocation34_spill]] %s2715_s9 }
   0x7   :  { %2746 = sst [smem:[#allocation35_spill]] %s2716_s10 }
   0x8   :  { %15 = vsyncpa [#allocation4], 0 }
   0x9   :  { %17 = vsyncpa [#allocation4 + $0x1], 0 }
   0xa   :  { %18 = vsyncpa [#allocation7], 0 }
   0xb   :  { %20 = vsyncpa [#allocation7 + $0x1], 0 }
   0xc   :  { %21 = vsyncpa [#allocation10], 0 }
   0xd   :  { %23 = vsyncpa [#allocation10 + $0x1], 0 }
   0xe   :  { %24 = vsyncpa [#allocation13], 0 }
   0xf   :  { %25 = vsyncpa [#allocation5], 0 }
  0x10   :  { %27 = vsyncpa [#allocation5 + $0x1], 0  ;;  %s2187_s13 = smov 0   ;;  %s2189_s14 = smov 0  }
  0x11   :  { %s2191_s15 = smov 0   ;;  %s2193_s16 = smov 0  }
  0x12   :  { %s2195_s17 = smov 0   ;;  %s2197_s18 = smov 0  }
  0x13 LB: > { %2747 = sst [smem:[#allocation22_spill]] %s2091_s13  ;;  %s2218_s19 = sadd.s32 4294967295, %s2111_s18   ;;  %s2111_s18 = sphi %s2197_s18, %s33_s18   ;;  %s2107_s17 = sphi %s2195_s17, %s2801_s17   ;;  %s2103_s16 = sphi %s2193_s16, %s2800_s16   ;;  %s2099_s15 = sphi %s2191_s15, %s2796_s15   ;;  %s2095_s14 = sphi %s2189_s14, %s2799_s14   ;;  %s2091_s13 = sphi %s2187_s13, %s2798_s13  }
  0x14   : > { %2748 = sst [smem:[#allocation23_spill]] %s2099_s15  ;;  %s1499_s20 = sadd.s32 4294967294, %s2111_s18  }
  0x15   : > { %2749 = sst [smem:[#allocation24_spill]] %s2103_s16  ;;  %p61_p0 = scmp.ne.s32.totalorder %s2099_s15, %s2095_s14 }
  0x16   : > { %p62_p1 = scmp.eq.s32.totalorder %s2111_s18, 0  ;;  %p67_p2 = scmp.ne.s32.totalorder %s2095_s14, %s2091_s13 }
  0x17   : > { %p2720_p3 = scmp.eq.s32.totalorder %s2218_s19, 0  ;;  %p299_p4 = scmp.eq.s32.totalorder %s2218_s19, 1 }
  0x18   : > { %p2229_p5 = por %p62_p1, %p61_p0  ;;  %p305_p6 = scmp.eq.s32.totalorder %s1499_s20, 1 }
  0x19   : > { %p2235_p7 = por %p2720_p3, %p67_p2  ;;  %p2239_p8 = por %p299_p4, %p61_p0 }
  0x1a   : > { %p2243_p9 = por %p305_p6, %p67_p2  ;;  %p1500_p10 = scmp.ge.s32.totalorder %s2111_s18, 1 }
  0x1b   : > { %s2751_s23 = scalar_select %p2235_p7, 1, 0 }
  0x1c   : > { %s2752_s24 = scalar_select %p2239_p8, 1, 0 }
  0x1d   : > { %s2754_s25 = scalar_select %p2243_p9, 1, 0 }
  0x1e   : > { %2753 = sst [smem:[#allocation25_spill]] %s2752_s24  ;;  %p312_p11 = scmp.lt.s32.totalorder %s2111_s18, 3 }
  0x1f   : > { %2755 = sst [smem:[#allocation26_spill]] %s2754_s25  ;;  %s2113_s27 = smov [#allocation11]  }
  0x20   : > { %p2249_p12 = pnand %p1500_p10, %p312_p11  ;;  %s324_s28 = sshll.u32 %s2113_s27, 4  ;;  %s2253_s28 = int_to_ptr.vmem [resolvable:$true] %s324_s28 }
  0x21   : > { %s2114_s30 = smov [#allocation12]   ;;  %s2758_s4 = sld [smem:[#allocation30_spill]] }
  0x22   : > { %s2756_s26 = scalar_select %p2249_p12, 1, 0 }
  0x23   : > { %p1684_p13 = pneg %p2249_p12  ;;  %s340_s11 = sshll.u32 %s2114_s30, 4  ;;  %s2264_s11 = int_to_ptr.vmem [resolvable:$true] %s340_s11 }
  0x25   : > { %p2260_p1 = pnand %p1684_p13, %p2720_p3 }
  0x27   : > { %s2757_s29 = scalar_select %p2260_p1, 1, 0 }
  0x28   : > { %s1809_s27 = scalar_lea.hbm %s2758_s4, 256  ;;  %p2275_p4 = pneg %p2260_p1 }
  0x29   : > { %p1810_p2 = scmp.ne.s32.totalorder %s2758_s4, %s1809_s27  ;;  %p1816_p11 = scmp.lt.u32.totalorder %s1809_s27, %s2758_s4 }
  0x2a   : > { %s2759_s10 = scalar_select %p2275_p4, 1, 0 }
  0x2b   : > { %p1812_p6 = pnand %p2275_p4, %p1810_p2 }
  0x2d   : > { %p1813_p10 = pneg %p1812_p6 }
  0x2f   : > { %p1818_p13 = pnand %p1816_p11, %p1813_p10 }
  0x31   : > { %1821 = shalt.err (!%p1818_p13)
}
  0x32   : > { %s1822_s13 = scalar_lea.vmem %s2253_s28, 256  ;;  %p1830_p8 = scmp.lt.s32.totalorder %s2253_s28, %s2253_s28 }
  0x33   : > { %p1823_p0 = scmp.ne.s32.totalorder %s2253_s28, %s1822_s13  ;;  %p1831_p7 = scmp.lt.s32.totalorder %s1822_s13, %s1822_s13 }
  0x35   : > { %p1825_p3 = pnand %p1823_p0, %p2275_p4  ;;  %p1832_p2 = por %p1831_p7, %p1830_p8 }
  0x37   : > { %p1826_p9 = pneg %p1825_p3 }
  0x39   : > { %p1833_p6 = pnand %p1832_p2, %p1826_p9 }
  0x3b   : > { %1836 = shalt.err (!%p1833_p6)
}
  0x3c   : > { %s2725_s21 = smov 64   ;;  %s2727_s9 = smov 4  }
  0x3d   : > { %1687 = dma.hbm_to_vmem [thread:$0]  (!%p2260_p1), %s2758_s4, 256, %s2253_s28, [#allocation10], %s2725_s21, %s2725_s21, %s2727_s9  }
  0x3e   : > { %s2760_s6 = sld [smem:[#allocation32_spill]] }
  0x44   : > { %s1837_s13 = scalar_lea.hbm %s2760_s6, 256 }
  0x45   : > { %p1838_p3 = scmp.ne.s32.totalorder %s2760_s6, %s1837_s13  ;;  %p1844_p9 = scmp.lt.u32.totalorder %s1837_s13, %s2760_s6 }
  0x47   : > { %p1840_p7 = pnand %p1838_p3, %p2275_p4 }
  0x49   : > { %p1841_p8 = pneg %p1840_p7 }
  0x4b   : > { %p1846_p0 = pnand %p1844_p9, %p1841_p8 }
  0x4d   : > { %1849 = shalt.err (!%p1846_p0)
}
  0x4e   : > { %s1850_s28 = scalar_lea.vmem %s2264_s11, 256  ;;  %p1858_p2 = scmp.lt.s32.totalorder %s2264_s11, %s2264_s11 }
  0x4f   : > { %p1851_p10 = scmp.ne.s32.totalorder %s2264_s11, %s1850_s28  ;;  %p1859_p6 = scmp.lt.s32.totalorder %s1850_s28, %s1850_s28 }
  0x51   : > { %p1853_p11 = pnand %p1851_p10, %p2275_p4  ;;  %p1860_p3 = por %p1859_p6, %p1858_p2 }
  0x53   : > { %p1854_p13 = pneg %p1853_p11 }
  0x55   : > { %p1861_p7 = pnand %p1860_p3, %p1854_p13 }
  0x57   : > { %1864 = shalt.err (!%p1861_p7)
}
  0x58   : > { %1690 = dma.hbm_to_vmem [thread:$0]  (!%p2260_p1), %s2760_s6, 256, %s2264_s11, [#allocation13], %s2725_s21, %s2725_s21, %s2727_s9  }
  0x59   : > { %s2761_s24 = sadd.s32 1, %s2107_s17  ;;  %p1714_p9 = scmp.lt.s32.totalorder %s2111_s18, 2 }
  0x5a   : > { %p47_p8 = scmp.ge.s32.totalorder %s2761_s24, 2  ;;  %s2329_s12 = sand.u32 1, %s2099_s15  }
  0x5b   : > { %s2332_s25 = sshll.u32 %s2107_s17, 7  ;;  %s2762_s20 = smov %s2761_s24 }
  0x5c   : > { %s2803_s20 = smov (%p47_p8, %s2762_s20), 0  ;;  %s2339_s27 = sshll.u32 %s2329_s12, 3 }
  0x5d   : > { %2763 = sst [smem:[#allocation27_spill]] %s2803_s20  ;;  %p2343_p0 = pnand %p1714_p9, %p2229_p5 }
  0x5e   : > { %s49_s30 = ssub.s32 %s2107_s17, %s2803_s20  ;;  %s2730_s13 = sand.u32 1, %s2111_s18  }
  0x5f   : > { %s2764_s11 = scalar_select %p2343_p0, 1, 0 }
  0x60   : > { %p52_p10 = scmp.eq.s32.totalorder %s49_s30, 0  ;;  %s2765_s28 = sadd.s32 1, %s2099_s15 }
  0x61   : > { %s2767_s1 = sld [smem:[#allocation29_spill]]  ;;  %s396_s22 = scalar_lea.vmem [#allocation6], %s2339_s27 }
  0x62   : > { %s2353_s8 = scalar_select %p52_p10, %s2099_s15, %s2765_s28  }
  0x63   : > { %s403_s9 = sshll.u32 %s396_s22, 4  ;;  %s2366_s4 = scalar_lea.sflag [#allocation7], %s2730_s13  ;;  %s2362_s9 = int_to_ptr.vmem [resolvable:$true] %s403_s9 }
  0x64   : > { %2766 = sst [smem:[#allocation28_spill]] %s2353_s8  ;;  %p2372_p11 = pneg %p2343_p0 }
  0x67   : > { %s2359_s21 = scalar_lea.hbm %s2767_s1, %s2332_s25  ;;  %s1870_s22 = scalar_lea.hbm %s2767_s1, 256 }
  0x68   : > { %s1865_s30 = scalar_lea.hbm %s2359_s21, 128  ;;  %p1871_p6 = scmp.lt.u32.totalorder %s2359_s21, %s2767_s1 }
  0x69   : > { %p1866_p5 = scmp.ne.s32.totalorder %s2359_s21, %s1865_s30  ;;  %p1872_p3 = scmp.lt.u32.totalorder %s1870_s22, %s1865_s30 }
  0x6a   : > { %p1874_p8 = scmp.lt.u32.totalorder %s1865_s30, %s2359_s21 }
  0x6b   : > { %p1868_p13 = pnand %p2372_p11, %p1866_p5  ;;  %p1873_p7 = por %p1872_p3, %p1871_p6 }
  0x6d   : > { %p1869_p2 = pneg %p1868_p13  ;;  %p1875_p9 = por %p1874_p8, %p1873_p7 }
  0x6f   : > { %p1876_p10 = pnand %p1875_p9, %p1869_p2 }
  0x71   : > { %1879 = shalt.err (!%p1876_p10)
}
  0x72   : > { %s1880_s13 = scalar_lea.vmem %s2362_s9, 128  ;;  %s2117_s16 = smov [#allocation6]  }
  0x73   : > { %p1881_p5 = scmp.ne.s32.totalorder %s2362_s9, %s1880_s13  ;;  %s1885_s24 = sshll.u32 %s2117_s16, 4  ;;  %s1886_s24 = int_to_ptr.vmem [resolvable:$false] %s1885_s24 }
  0x74   : > { %s1887_s6 = scalar_lea.vmem %s1886_s24, 256  ;;  %p1888_p1 = scmp.lt.s32.totalorder %s2362_s9, %s1886_s24 }
  0x75   : > { %p1883_p13 = pnand %p1881_p5, %p2372_p11  ;;  %p1889_p4 = scmp.lt.s32.totalorder %s1887_s6, %s1880_s13 }
  0x77   : > { %p1884_p12 = pneg %p1883_p13  ;;  %p1890_p6 = por %p1889_p4, %p1888_p1 }
  0x79   : > { %p1891_p3 = pnand %p1890_p6, %p1884_p12 }
  0x7b   : > { %1894 = shalt.err (!%p1891_p3)
}
  0x7c   : > { %s2769_s20 = smov 4   ;;  %s2770_s30 = smov 64  }
  0x7d   : > { %1700 = dma.hbm_to_vmem [thread:$0]  (!%p2343_p0), %s2359_s21, 128, %s2362_s9, %s2366_s4, %s2770_s30, %s2770_s30, %s2769_s20  }
  0x7e   : > { %s2118_s22 = smov [#allocation14]   ;;  %s1895_s13 = scalar_lea.hbm %s2713_s7, 256 }
  0x7f   : > { %s353_s1 = sshll.u32 %s2118_s22, 4  ;;  %p1896_p12 = scmp.ne.s32.totalorder %s2713_s7, %s1895_s13  ;;  %s354_s1 = int_to_ptr.vmem [resolvable:$true] %s353_s1 }
  0x80   : > { %p2771_p1 = scmp.ne.s32.totalorder %s2759_s10, 0  ;;  %p1902_p7 = scmp.lt.u32.totalorder %s1895_s13, %s2713_s7 }
  0x82   : > { %p1898_p4 = pnand %p1896_p12, %p2771_p1 }
  0x84   : > { %p1899_p2 = pneg %p1898_p4 }
  0x86   : > { %p1904_p8 = pnand %p1902_p7, %p1899_p2 }
  0x88   : > { %1907 = shalt.err (!%p1904_p8)
}
  0x89   : > { %s1908_s21 = scalar_lea.vmem %s354_s1, 256  ;;  %p1916_p13 = scmp.lt.s32.totalorder %s354_s1, %s354_s1 }
  0x8a   : > { %p1909_p9 = scmp.ne.s32.totalorder %s354_s1, %s1908_s21  ;;  %p1917_p6 = scmp.lt.s32.totalorder %s1908_s21, %s1908_s21 }
  0x8c   : > { %p1911_p10 = pnand %p1909_p9, %p2771_p1  ;;  %p1918_p3 = por %p1917_p6, %p1916_p13 }
  0x8e   : > { %p1912_p5 = pneg %p1911_p10 }
  0x90   : > { %p1919_p0 = pnand %p1918_p3, %p1912_p5 }
  0x92   : > { %1922 = shalt.err (!%p1919_p0)
}
  0x93   : > { %p2772_p12 = scmp.ne.s32.totalorder %s2757_s29, 0  ;;  %s2424_s8 = scalar_lea.hbm %s2706_s0, %s2332_s25 }
  0x94   : > { %s377_s29 = scalar_lea.vmem [#allocation3], %s2339_s27  ;;  %s374_s16 = scalar_lea.sflag [#allocation4], %s2329_s12 }
  0x95   : > { %1693 = dma.hbm_to_vmem [thread:$0]  (!%p2772_p12), %s2713_s7, 256, %s354_s1, [#allocation13], %s2770_s30, %s2770_s30, %s2769_s20  }
  0x96   : > { %s385_s22 = sshll.u32 %s377_s29, 4  ;;  %s1923_s13 = scalar_lea.hbm %s2424_s8, 128  ;;  %s386_s22 = int_to_ptr.vmem [resolvable:$true] %s385_s22 }
  0x97   : > { %p1924_p0 = scmp.ne.s32.totalorder %s2424_s8, %s1923_s13  ;;  %s1928_s6 = scalar_lea.hbm %s2706_s0, 256 }
  0x98   : > { %p1929_p2 = scmp.lt.u32.totalorder %s2424_s8, %s2706_s0  ;;  %p1930_p7 = scmp.lt.u32.totalorder %s1928_s6, %s1923_s13 }
  0x99   : > { %p1926_p1 = pnand %p1924_p0, %p2372_p11  ;;  %p1932_p9 = scmp.lt.u32.totalorder %s1923_s13, %s2424_s8 }
  0x9a   : > { %p1931_p8 = por %p1930_p7, %p1929_p2 }
  0x9b   : > { %p1927_p4 = pneg %p1926_p1 }
  0x9c   : > { %p1933_p10 = por %p1932_p9, %p1931_p8 }
  0x9e   : > { %p1934_p5 = pnand %p1933_p10, %p1927_p4 }
  0xa0   : > { %1937 = shalt.err (!%p1934_p5)
}
  0xa1   : > { %s1938_s15 = scalar_lea.vmem %s386_s22, 128  ;;  %s2119_s10 = smov [#allocation3]  }
  0xa2   : > { %p1939_p13 = scmp.ne.s32.totalorder %s386_s22, %s1938_s15  ;;  %s1943_s9 = sshll.u32 %s2119_s10, 4  ;;  %s1944_s9 = int_to_ptr.vmem [resolvable:$false] %s1943_s9 }
  0xa3   : > { %s1945_s29 = scalar_lea.vmem %s1944_s9, 256  ;;  %p1946_p12 = scmp.lt.s32.totalorder %s386_s22, %s1944_s9 }
  0xa4   : > { %p1941_p6 = pnand %p1939_p13, %p2372_p11  ;;  %p1947_p0 = scmp.lt.s32.totalorder %s1945_s29, %s1938_s15 }
  0xa6   : > { %p1942_p3 = pneg %p1941_p6  ;;  %p1948_p1 = por %p1947_p0, %p1946_p12 }
  0xa8   : > { %p1949_p2 = pnand %p1948_p1, %p1942_p3 }
  0xaa   : > { %1952 = shalt.err (!%p1949_p2)
}
  0xab   : > { %p2773_p7 = scmp.ne.s32.totalorder %s2764_s11, 0  ;;  %s2449_s1 = scalar_lea.hbm %s2708_s2, %s2332_s25 }
  0xac   : > { %s417_s6 = scalar_lea.vmem [#allocation8], %s2339_s27  ;;  %s1953_s5 = scalar_lea.hbm %s2449_s1, 128 }
  0xad   : > { %1697 = dma.hbm_to_vmem [thread:$0]  (!%p2773_p7), %s2424_s8, 128, %s386_s22, %s374_s16  }
  0xae   : > { %s424_s21 = sshll.u32 %s417_s6, 4  ;;  %p1954_p4 = scmp.ne.s32.totalorder %s2449_s1, %s1953_s5  ;;  %s2452_s21 = int_to_ptr.vmem [resolvable:$true] %s424_s21 }
  0xaf   : > { %s1958_s22 = scalar_lea.hbm %s2708_s2, 256  ;;  %p1959_p10 = scmp.lt.u32.totalorder %s2449_s1, %s2708_s2 }
  0xb0   : > { %p1956_p8 = pnand %p1954_p4, %p2372_p11  ;;  %p1960_p5 = scmp.lt.u32.totalorder %s1958_s22, %s1953_s5 }
  0xb1   : > { %p1962_p6 = scmp.lt.u32.totalorder %s1953_s5, %s2449_s1 }
  0xb2   : > { %p1957_p9 = pneg %p1956_p8  ;;  %p1961_p13 = por %p1960_p5, %p1959_p10 }
  0xb4   : > { %p1963_p3 = por %p1962_p6, %p1961_p13 }
  0xb6   : > { %p1964_p12 = pnand %p1963_p3, %p1957_p9 }
  0xb8   : > { %1967 = shalt.err (!%p1964_p12)
}
  0xb9   : > { %s1968_s27 = scalar_lea.vmem %s2452_s21, 128  ;;  %s2120_s10 = smov [#allocation8]  }
  0xba   : > { %p1969_p0 = scmp.ne.s32.totalorder %s2452_s21, %s1968_s27  ;;  %s1973_s9 = sshll.u32 %s2120_s10, 4  ;;  %s1974_s9 = int_to_ptr.vmem [resolvable:$false] %s1973_s9 }
  0xbb   : > { %s1975_s29 = scalar_lea.vmem %s1974_s9, 256  ;;  %p1976_p4 = scmp.lt.s32.totalorder %s2452_s21, %s1974_s9 }
  0xbc   : > { %p1971_p1 = pnand %p1969_p0, %p2372_p11  ;;  %p1977_p8 = scmp.lt.s32.totalorder %s1975_s29, %s1968_s27 }
  0xbe   : > { %p1972_p2 = pneg %p1971_p1  ;;  %p1978_p10 = por %p1977_p8, %p1976_p4 }
  0xc0   : > { %p1979_p5 = pnand %p1978_p10, %p1972_p2 }
  0xc2   : > { %1982 = shalt.err (!%p1979_p5)
}
  0xc3   : > { %1703 = dma.hbm_to_vmem [thread:$0]  (!%p2773_p7), %s2449_s1, 128, %s2452_s21, %s2366_s4, %s2770_s30, %s2770_s30, %s2769_s20  }
  0xc4   : > { %s1513_s13 = sshll.u32 %s2329_s12, 1  ;;  %s1514_s24 = sshll.u32 %s2107_s17, 5 }
  0xc5   : > { %s2484_s15 = scalar_lea.hbm %s2709_s3, %s1514_s24  ;;  %s438_s8 = scalar_lea.vmem [#allocation9], %s1513_s13 }
  0xc6   : > { %s446_s22 = sshll.u32 %s438_s8, 4  ;;  %s2774_s16 = sand.u32 1, %s2111_s18   ;;  %s447_s22 = int_to_ptr.vmem [resolvable:$true] %s446_s22 }
  0xc7   : > { %s435_s25 = scalar_lea.sflag [#allocation10], %s2774_s16  ;;  %s1983_s27 = scalar_lea.hbm %s2484_s15, 32 }
  0xc8   : > { %p1984_p9 = scmp.ne.s32.totalorder %s2484_s15, %s1983_s27  ;;  %s1988_s20 = scalar_lea.hbm %s2709_s3, 64 }
  0xc9   : > { %p1989_p3 = scmp.lt.u32.totalorder %s2484_s15, %s2709_s3  ;;  %p1990_p12 = scmp.lt.u32.totalorder %s1988_s20, %s1983_s27 }
  0xca   : > { %p1986_p13 = pnand %p1984_p9, %p2372_p11  ;;  %p1992_p1 = scmp.lt.u32.totalorder %s1983_s27, %s2484_s15 }
  0xcb   : > { %p1991_p0 = por %p1990_p12, %p1989_p3 }
  0xcc   : > { %p1987_p6 = pneg %p1986_p13 }
  0xcd   : > { %p1993_p2 = por %p1992_p1, %p1991_p0 }
  0xcf   : > { %p1994_p4 = pnand %p1993_p2, %p1987_p6 }
  0xd1   : > { %1997 = shalt.err (!%p1994_p4)
}
  0xd2   : > { %s1998_s21 = scalar_lea.vmem %s447_s22, 32  ;;  %s2121_s10 = smov [#allocation9]  }
  0xd3   : > { %p1999_p8 = scmp.ne.s32.totalorder %s447_s22, %s1998_s21  ;;  %s2003_s9 = sshll.u32 %s2121_s10, 4  ;;  %s2004_s9 = int_to_ptr.vmem [resolvable:$false] %s2003_s9 }
  0xd4   : > { %s2005_s29 = scalar_lea.vmem %s2004_s9, 64  ;;  %p2006_p9 = scmp.lt.s32.totalorder %s447_s22, %s2004_s9 }
  0xd5   : > { %p2001_p10 = pnand %p1999_p8, %p2372_p11  ;;  %p2007_p13 = scmp.lt.s32.totalorder %s2005_s29, %s1998_s21 }
  0xd7   : > { %p2002_p5 = pneg %p2001_p10  ;;  %p2008_p7 = por %p2007_p13, %p2006_p9 }
  0xd9   : > { %p2009_p3 = pnand %p2008_p7, %p2002_p5 }
  0xdb   : > { %2012 = shalt.err (!%p2009_p3)
}
  0xdc   : > { %p2775_p12 = scmp.ne.s32.totalorder %s2764_s11, 0  ;;  %p2776_p6 = scmp.ne.s32.totalorder %s2756_s26, 0 }
  0xdd   : > { %s2508_s28 = sand.u32 (!%p2776_p6), 1, %s2095_s14   ;;  %p2777_p11 = scmp.ne.s32.totalorder (!%p2776_p6), %s2751_s23, 0 }
  0xde   : > { %1706 = dma.hbm_to_vmem [thread:$0]  (!%p2775_p12), %s2484_s15, 32, %s447_s22, %s435_s25  }
  0xdf   : > { %455 = sbr.rel (%p2776_p6) target bundleno = 2022 (0x7e6), region = 60  ;;  %s2511_s13 = sshll.u32 (!%p2776_p6), %s2508_s28, 3 }
  0xe0   : > { %s458_s24 = scalar_lea.sflag (!%p2776_p6), [#allocation4], %s2508_s28  ;;  %s461_s6 = scalar_lea.vmem (!%p2776_p6), [#allocation3], %s2511_s13 }
  0xe6   : > { %2066 = dma.done.wait (%p2777_p11), %s458_s24, 128  }
  0xe7   : > { %2068 = vsyncadd (%p2777_p11), %s458_s24, 4294967168  ;;  %s466_s26 = sand.u32 1, %s2218_s19   ;;  %s470_s5 = scalar_lea.vmem [#allocation6], %s2511_s13 }
  0xe8   : > { %s467_s11 = scalar_lea.sflag [#allocation7], %s466_s26 }
  0xe9   : > { %2070 = dma.done.wait (%p2777_p11), %s467_s11, 256  }
  0xea   : > { %2072 = vsyncadd (%p2777_p11), %s467_s11, 4294967040  ;;  %s1519_s15 = sshll.u32 %s2508_s28, 1  ;;  %s479_s8 = scalar_lea.vmem [#allocation8], %s2511_s13 }
  0xeb   : > { %s485_s22 = scalar_lea.sflag [#allocation10], %s466_s26  ;;  %s2527_s16 = scalar_lea.vmem [#allocation9], %s1519_s15 }
  0xec   : > { %2074 = dma.done.wait (%p2777_p11), %s485_s22, 32  }
  0xed   : > { %2076 = vsyncadd (%p2777_p11), %s485_s22, 4294967264  ;;  %p2778_p7 = scmp.eq.s32.totalorder %s2218_s19, 0 }
  0xef   : > { %2078 = dma.done.wait (%p2778_p7), [#allocation10], 256   ;;  %p2779_p0 = pmov %p2778_p7 }
  0xf1   : > { %2080 = vsyncadd (%p2779_p0), [#allocation10], 4294967040  ;;  %p2780_p1 = pmov %p2779_p0 }
  0xf2   : > { %p2781_p2 = pmov %p2779_p0 }
  0xf3   : > { %2082 = dma.done.wait (%p2780_p1), [#allocation13], 512  }
  0xf4   : > { %2084 = vsyncadd (%p2781_p2), [#allocation13], 4294966784  ;;  %v2122_v0 = vmov 0.0   ;;  %vm2123_vm0 = vmmov 0   ;;  %s2782_s27 = sld [smem:[#allocation31_spill]]  ;;  %v1783_v3 = vld [vmem:[#allocation11] sm:$0xff]  }
  0xf5   : > { %1590 = vmatprep.subr.bf16.mxu1 %v2122_v0  ;;  %1582 = vmatprep.subr.bf16.mxu0 %v2122_v0  ;;  %v1784_v4 = vld [vmem:[%s470_s5] sm:$0xff]   ;;  %vm579_vm1 = vcmask 261120   ;;  %v2557_v6 = vld [vmem:[%s461_s6] sm:$0xff]  ;;  %vm756_vm2 = vcmask 64512   ;;  %s2124_s12 = smov 112   ;;  %s2125_s20 = smov 120  }
  0xf6   : > { %1594 = vmatprep.mubr.msk.bf16.mxu1 %vm2123_vm0, %v2122_v0  ;;  %1586 = vmatprep.mubr.msk.bf16.mxu0 %vm2123_vm0, %v2122_v0  ;;  %v1785_v5 = vld [vmem:[#allocation11 + $0x8] sm:$0xff]   ;;  %v562_v7 = vpack.c.bf16 %v2557_v6, %v2557_v6  ;;  %s2126_s30 = smov 104   ;;  %v1786_v19 = vld [vmem:[#allocation12] sm:$0xff]   ;;  %v1787_v20 = vld [vmem:[#allocation12 + $0x8] sm:$0xff]   ;;  %v2127_v32 = vmov 0   ;;  %vm808_vm5 = vcmask 130048  }
  0xf7   : > { %1583 = vmatpush3.bf16.msra.mxu0 %v1783_v3  ;;  %v1788_v21 = vld [vmem:[%s479_s8] sm:$0xff]   ;;  %v560_v31 = vld [vmem:[%s2527_s16] sm:$0x3]  ;;  %s2128_s1 = smov 8   ;;  %s2129_s21 = smov 16   ;;  %vm982_vm6 = vcmask 130112  }
  0xf8   : > { %1584 = vmatprep.subr.bf16.mxu0 %v2122_v0  ;;  %vm561_vm3 = vnez %v560_v31  ;;  %s2130_s10 = smov 24   ;;  %vm1098_vm7 = vcmask 195712   ;;  %vm1214_vm8 = vcmask 261312   ;;  %s2785_s9 = sld [smem:[#allocation24_spill]] }
  0xf9   : > { %v804_v33 = vsel %vm561_vm3, 16843009, %v2127_v32  ;;  %s2786_s29 = sld [smem:[#allocation25_spill]]  ;;  %s2788_s15 = sld [smem:[#allocation34_spill]] }
  0xfa   : > { %v1781_v1 = vld [vmem:[%s2782_s27] sm:$0xff]   ;;  %v1782_v2 = vld [vmem:[%s2782_s27 + $0x8] sm:$0xff]   ;;  %v805_v34 = vunpack.c.0.s8 %v804_v33  ;;  %s2787_s26 = sld [smem:[#allocation33_spill]]  ;;  %s551_s22 = scalar_lea.vmem [#allocation15], %s2511_s13 }
  0xfb   : > { %1591 = vmatpush3.bf16.msra.mxu1 %v1781_v1  ;;  %1585 = vmatpush3.bf16.msra.mxu0 %v1785_v5  ;;  %s1323_s16 = sshll.u32 %s551_s22, 4  ;;  %s2789_s4 = sld [smem:[#allocation35_spill]]  ;;  %s2658_s16 = int_to_ptr.vmem [resolvable:$true] %s1323_s16 }
  0xfc   : > { %1592 = vmatprep.subr.bf16.mxu1 %v2122_v0  ;;  %1598 = vmatprep.subr.bf16.mxu0 %v2122_v0  ;;  %vm2603_vm4 = vcmp.ne.s32.totalorder %v805_v34, 0  ;;  %s2131_s13 = smov [#allocation15]  }
  0xfe   : > { %1587 = vmatmul.mubr.msk.bf16.vlgmr.msra.gmra.mrb[0].mxu0 %vm579_vm1, %v562_v7  ;;  %s1549_s8 = sshll.u32 %s2785_s9, 7 }
  0xff   : > { %1593 = vmatpush3.bf16.msra.mxu1 %v1782_v2  ;;  %1602 = vmatprep.mubr.msk.bf16.mxu0 %vm2123_vm0, %v2122_v0  ;;  %p2790_p8 = scmp.ne.s32.totalorder %s2786_s29, 0 }
 0x100   : > { %1606 = vmatprep.subr.bf16.mxu1 %v2122_v0  ;;  %1599 = vmatpush3.bf16.msra.mxu0 %v1786_v19 }
 0x101   : > { %1600 = vmatprep.subr.bf16.mxu0 %v2122_v0  ;;  %s2656_s19 = scalar_lea.hbm %s2789_s4, %s1549_s8 }
 0x102   : > { %1595 = vmatmul.mubr.msk.bf16.vlgmr.msra.gmra.mrb[0].mxu1 %vm579_vm1, %v1784_v4 }
 0x103   : > { %1608 = vmatprep.mubr.msk.bf16.mxu1 %vm2123_vm0, %v2122_v0 }
 0x104   : > { %1601 = vmatpush3.bf16.msra.mxu0 %v1787_v20 }
 0x105   : > { %1612 = vmatprep.subr.bf16.mxu0 %v2122_v0 }
 0x107   : > { %1603 = vmatmul.mubr.msk.bf16.vlgmr.msra.gmra.mrb[4].mxu0 %vm579_vm1, %v1788_v21 }
 0x108   : > { %1614 = vmatprep.mubr.msk.bf16.mxu0 %vm2123_vm0, %v2122_v0 }
 0x1d1   : > { %v617_v11 = vpop.f32.mrb[0].mxu0 }
 0x1d2   : > { %v1588_v14 = vpop.f32.mrb[1].mxu0  ;;  %v753_v16 = vpack.c.bf16 %v617_v11, %v617_v11 }
 0x1d3   : > { %v620_v15 = vpop.f32.mrb[2].mxu0 }
 0x1d4   : > { %v1589_v18 = vpop.f32.mrb[3].mxu0 }
 0x1d5   : > { %v681_v8 = vpop.f32.mrb[0].mxu1 }
 0x1d6   : > { %v1596_v9 = vpop.f32.mrb[1].mxu1 }
 0x1d7   : > { %v684_v10 = vpop.f32.mrb[2].mxu1 }
 0x1d8   : > { %v754_v12 = vpack.c.bf16 %v684_v10, %v681_v8  ;;  %v1597_v13 = vpop.f32.mrb[3].mxu1 }
 0x1da   : > { %986 = vrot.lane.b32.xlu1 %v754_v12, %s2124_s12  ;;  %869 = vrot.lane.b32.xlu0 %v754_v12, %s2125_s20  ;;  %v761_v17 = vsel %vm756_vm2, %v754_v12, 0  ;;  %v746_v43 = vpop.f32.mrb[4].mxu0 }
 0x1db   : > { %1607 = vmatpush3.bf16.xpose.msra.mxu1 %v761_v17  ;;  %v1604_v44 = vpop.f32.mrb[5].mxu0 }
 0x1dc   : > { %1618 = vmatprep.subr.bf16.mxu1 %v2122_v0  ;;  %v749_v45 = vpop.f32.mrb[6].mxu0 }
 0x1dd   : > { %v755_v46 = vpack.c.bf16 %v749_v45, %v746_v43  ;;  %v1605_v47 = vpop.f32.mrb[7].mxu0 }
 0x1de   : > { %984 = vrot.lane.b32.xlu1 %v753_v16, %s2124_s12  ;;  %866 = vrot.lane.b32.xlu0 %v753_v16, %s2125_s20 }
 0x1df   : > { %1613 = vmatpush3.bf16.msra.mxu0 %v755_v46 }
 0x1e0   : > { %1624 = vmatprep.subr.bf16.mxu0 %v2122_v0 }
 0x1e2   : > { %1100 = vrot.lane.b32.xlu1 %v753_v16, %s2126_s30  ;;  %1102 = vrot.lane.b32.xlu0 %v754_v12, %s2126_s30 }
 0x1e3   : > { %1609 = vmatmul.mubr.msk.bf16.vlgmr.msra.gmra.mrb[4].mxu1 %vm756_vm2, %v753_v16 }
 0x1e4   : > { %1620 = vmatprep.mubr.msk.bf16.mxu1 %vm2123_vm0, %v2122_v0 }
 0x24c   : > { %v870_v22 = vpop.permute.xlu0 %869  ;;  %v987_v24 = vpop.permute.xlu1 %986 }
 0x24d   : > { %v875_v23 = vsel %vm756_vm2, %v870_v22, 0  ;;  %v992_v26 = vsel %vm756_vm2, %v987_v24, 0 }
 0x24e   : > { %1619 = vmatpush3.bf16.xpose.msra.mxu1 %v875_v23 }
 0x24f   : > { %1630 = vmatprep.subr.bf16.mxu1 %v2122_v0 }
 0x250   : > { %v867_v25 = vpop.permute.xlu0 %866  ;;  %v985_v28 = vpop.permute.xlu1 %984 }
 0x254   : > { %v1103_v27 = vpop.permute.xlu0 %1102  ;;  %v1101_v30 = vpop.permute.xlu1 %1100 }
 0x255   : > { %1621 = vmatmul.mubr.msk.bf16.vlgmr.msra.gmra.mrb[8].mxu1 %vm756_vm2, %v867_v25  ;;  %v1108_v29 = vsel %vm756_vm2, %v1103_v27, 0 }
 0x256   : > { %1631 = vmatpush3.bf16.xpose.msra.mxu1 %v992_v26  ;;  %1632 = vmatprep.mubr.msk.bf16.mxu1 %vm2123_vm0, %v2122_v0 }
 0x257   : > { %1642 = vmatprep.subr.bf16.mxu1 %v2122_v0 }
 0x25d   : > { %1633 = vmatmul.mubr.msk.bf16.vlgmr.msra.gmra.mrb[12].mxu1 %vm756_vm2, %v985_v28 }
 0x25e   : > { %1643 = vmatpush3.bf16.xpose.msra.mxu1 %v1108_v29  ;;  %1644 = vmatprep.mubr.msk.bf16.mxu1 %vm2123_vm0, %v2122_v0 }
 0x25f   : > { %1654 = vmatprep.subr.bf16.mxu1 %v2122_v0 }
 0x265   : > { %1645 = vmatmul.mubr.msk.bf16.vlgmr.msra.gmra.mrb[16].mxu1 %vm756_vm2, %v1101_v30 }
 0x266   : > { %1658 = vmatprep.mubr.msk.bf16.mxu1 %vm2123_vm0, %v2122_v0 }
 0x2b6   : > { %v797_v35 = vpop.f32.mrb[4].mxu1 }
 0x2b7   : > { %v803_v37 = vmul.f32 0.35355338, %v797_v35  ;;  %v1610_v38 = vpop.f32.mrb[5].mxu1 }
 0x2b8   : > { %v800_v39 = vpop.f32.mrb[6].mxu1 }
 0x2b9   : > { %v1611_v40 = vpop.f32.mrb[7].mxu1  ;;  %v807_v41 = vsel %vm2603_vm4, -1e+09, %v803_v37 }
 0x2ba   : > { %v809_v42 = vsel %vm808_vm5, %v807_v41, -inf }
 0x2bb   : > { %810 = vmax.xlane.f32.xlu0 %v809_v42 }
 0x328   : > { %v911_v48 = vpop.f32.mrb[8].mxu1 }
 0x329   : > { %v917_v49 = vmul.f32 0.35355338, %v911_v48  ;;  %v1622_v50 = vpop.f32.mrb[9].mxu1 }
 0x32a   : > { %v914_v51 = vpop.f32.mrb[10].mxu1 }
 0x32b   : > { %v1623_v52 = vpop.f32.mrb[11].mxu1  ;;  %v918_v53 = vsel %vm2603_vm4, -1e+09, %v917_v49 }
 0x32c   : > { %v919_v54 = vsel %vm808_vm5, %v918_v53, -inf }
 0x32d   : > { %920 = vmax.xlane.f32.xlu1 %v919_v54  ;;  %v1789_v54 = vld [vmem:[#allocation14] sm:$0xff]  }
 0x32e   : > { %1655 = vmatpush3.bf16.msra.mxu1 %v1789_v54 }
 0x32f   : > { %1656 = vmatprep.subr.bf16.mxu1 %v2122_v0 }
 0x330   : > { %v1028_v55 = vpop.f32.mrb[12].mxu1 }
 0x331   : > { %v1034_v56 = vmul.f32 0.35355338, %v1028_v55  ;;  %v1634_v57 = vpop.f32.mrb[13].mxu1  ;;  %v1790_v55 = vld [vmem:[#allocation14 + $0x8] sm:$0xff]  }
 0x332   : > { %v1031_v58 = vpop.f32.mrb[14].mxu1  ;;  %1657 = vmatpush3.bf16.msra.mxu1 %v1790_v55 }
 0x333   : > { %v1635_v59 = vpop.f32.mrb[15].mxu1  ;;  %v1035_v60 = vsel %vm2603_vm4, -1e+09, %v1034_v56 }
 0x334   : > { %v1036_v61 = vsel %vm808_vm5, %v1035_v60, -inf }
 0x335   : > { %1037 = vmax.xlane.f32.xlu0 %v1036_v61 }
 0x338   : > { %v1144_v62 = vpop.f32.mrb[16].mxu1 }
 0x339   : > { %v1150_v63 = vmul.f32 0.35355338, %v1144_v62  ;;  %v1646_v1 = vpop.f32.mrb[17].mxu1 }
 0x33a   : > { %v1147_v2 = vpop.f32.mrb[18].mxu1 }
 0x33b   : > { %v1647_v3 = vpop.f32.mrb[19].mxu1  ;;  %v1151_v4 = vsel %vm2603_vm4, -1e+09, %v1150_v63 }
 0x33c   : > { %v1152_v5 = vsel %vm808_vm5, %v1151_v4, -inf }
 0x33d   : > { %1153 = vmax.xlane.f32.xlu0 %v1152_v5 }
 0x348   : > { %v811_v7 = vpop.xlane.xlu0 %810 }
 0x349   : > { %v812_v8 = vsub.f32 %v807_v41, %v811_v7 }
 0x34b   : > { %v813_v9 = vmul.f32 1.442695, %v812_v8 }
 0x34d   : > { %1791 = vpow2.f32 %v813_v9 }
 0x357   : > { %v1792_v10 = vpop.eup %1791 }
 0x358   : > { %v815_v11 = vsel %vm808_vm5, %v1792_v10, 0.0 }
 0x359   : > { %816 = vadd.xlane.f32.xlu1 %v815_v11 }
 0x36a   : > { %932 = vrot.lane.b32.xlu1 %v755_v46, %s2125_s20  ;;  %s2013_s20 = scalar_lea.vmem %s2658_s16, 128 }
 0x36b   : > { %p2014_p4 = scmp.ne.s32.totalorder %s2658_s16, %s2013_s20 }
 0x36d   : > { %p2015_p10 = pnand %p2014_p4, %p2790_p8 }
 0x36f   : > { %p2016_p5 = pneg %p2015_p10 }
 0x3ba   : > { %v921_v12 = vpop.xlane.xlu1 %920 }
 0x3bb   : > { %v922_v13 = vsub.f32 %v918_v53, %v921_v12 }
 0x3bd   : > { %v923_v14 = vmul.f32 1.442695, %v922_v13 }
 0x3bf   : > { %1793 = vpow2.f32 %v923_v14 }
 0x3c2   : > { %v1038_v15 = vpop.xlane.xlu0 %1037 }
 0x3c3   : > { %v1039_v16 = vsub.f32 %v1035_v60, %v1038_v15 }
 0x3c5   : > { %v1040_v17 = vmul.f32 1.442695, %v1039_v16 }
 0x3c7   : > { %1795 = vpow2.f32 %v1040_v17 }
 0x3c9   : > { %v1794_v18 = vpop.eup %1793 }
 0x3ca   : > { %v1154_v19 = vpop.xlane.xlu0 %1153  ;;  %v925_v20 = vsel %vm808_vm5, %v1794_v18, 0.0 }
 0x3cb   : > { %v1155_v21 = vsub.f32 %v1151_v4, %v1154_v19  ;;  %926 = vadd.xlane.f32.xlu0 %v925_v20  ;;  %v1546_v20 = vld [vmem:[%s2787_s26] ss:$0 sm:$0xff] }
 0x3cd   : > { %v1156_v22 = vmul.f32 1.442695, %v1155_v21 }
 0x3cf   : > { %1797 = vpow2.f32 %v1156_v22  ;;  %v1547_v22 = vld [vmem:[%s2788_s15] ss:$0 sm:$0xff] }
 0x3d1   : > { %v1796_v23 = vpop.eup %1795 }
 0x3d2   : > { %v1042_v24 = vsel %vm808_vm5, %v1796_v23, 0.0 }
 0x3d3   : > { %1043 = vadd.xlane.f32.xlu1 %v1042_v24 }
 0x3d9   : > { %v1798_v25 = vpop.eup %1797 }
 0x3da   : > { %v1158_v26 = vsel %vm808_vm5, %v1798_v25, 0.0 }
 0x3db   : > { %1159 = vadd.xlane.f32.xlu0 %v1158_v26 }
 0x3e4   : > { %1164 = vrot.lane.b32.xlu1 %v755_v46, %s2126_s30  ;;  %s2017_s30 = sshll.u32 %s2131_s13, 4  ;;  %s2018_s30 = int_to_ptr.vmem [resolvable:$false] %s2017_s30 }
 0x3e5   : > { %p2020_p9 = scmp.lt.s32.totalorder %s2658_s16, %s2018_s30 }
 0x3e6   : > { %v817_v27 = vpop.xlane.xlu1 %816 }
 0x3e7   : > { %1799 = vrcp.f32 %v817_v27 }
 0x3ea   : > { %v933_v31 = vpop.permute.xlu1 %932 }
 0x3f1   : > { %v1800_v28 = vpop.eup %1799  ;;  %1048 = vrot.lane.b32.xlu0 %v755_v46, %s2124_s12  ;;  %s1309_s12 = scalar_lea.sflag [#allocation5], %s2508_s28 }
 0x3f2   : > { %v819_v29 = vmul.f32 %v1800_v28, %v1792_v10 }
 0x3f4   : > { %v820_v30 = vpack.c.bf16 %v819_v29, %v819_v29 }
 0x3f6   : > { %1615 = vmatmul.mubr.msk.bf16.vlgmr.msra.gmra.mrb[8].mxu0 %vm808_vm5, %v820_v30 }
 0x3f7   : > { %1625 = vmatpush3.bf16.msra.mxu0 %v933_v31  ;;  %1626 = vmatprep.mubr.msk.bf16.mxu0 %vm2123_vm0, %v2122_v0 }
 0x3f8   : > { %1636 = vmatprep.subr.bf16.mxu0 %v2122_v0 }
 0x458   : > { %v927_v32 = vpop.xlane.xlu0 %926 }
 0x459   : > { %1801 = vrcp.f32 %v927_v32 }
 0x460   : > { %v1044_v33 = vpop.xlane.xlu1 %1043 }
 0x461   : > { %1803 = vrcp.f32 %v1044_v33 }
 0x463   : > { %v1802_v34 = vpop.eup %1801 }
 0x464   : > { %v929_v35 = vmul.f32 %v1802_v34, %v1794_v18  ;;  %v1165_v42 = vpop.permute.xlu1 %1164 }
 0x466   : > { %v930_v36 = vpack.c.bf16 %v929_v35, %v929_v35 }
 0x468   : > { %v1160_v37 = vpop.xlane.xlu0 %1159  ;;  %1627 = vmatmul.mubr.msk.bf16.vlgmr.msra.gmra.mrb[12].mxu0 %vm808_vm5, %v930_v36 }
 0x469   : > { %1805 = vrcp.f32 %v1160_v37  ;;  %1638 = vmatprep.mubr.msk.bf16.mxu0 %vm2123_vm0, %v2122_v0 }
 0x46b   : > { %v1804_v38 = vpop.eup %1803 }
 0x46c   : > { %v1046_v39 = vmul.f32 %v1804_v38, %v1796_v23  ;;  %v1049_v40 = vpop.permute.xlu0 %1048 }
 0x46d   : > { %1637 = vmatpush3.bf16.msra.mxu0 %v1049_v40 }
 0x46e   : > { %v1047_v41 = vpack.c.bf16 %v1046_v39, %v1046_v39  ;;  %1648 = vmatprep.subr.bf16.mxu0 %v2122_v0 }
 0x470   : > { %1639 = vmatmul.mubr.msk.bf16.vlgmr.msra.gmra.mrb[16].mxu0 %vm808_vm5, %v1047_v41 }
 0x471   : > { %1649 = vmatpush3.bf16.msra.mxu0 %v1165_v42  ;;  %1650 = vmatprep.mubr.msk.bf16.mxu0 %vm2123_vm0, %v2122_v0 }
 0x473   : > { %v1806_v43 = vpop.eup %1805 }
 0x474   : > { %v1162_v44 = vmul.f32 %v1806_v43, %v1798_v25 }
 0x476   : > { %v1163_v45 = vpack.c.bf16 %v1162_v44, %v1162_v44 }
 0x478   : > { %1651 = vmatmul.mubr.msk.bf16.vlgmr.msra.gmra.mrb[20].mxu0 %vm808_vm5, %v1163_v45 }
 0x4c9   : > { %v858_v46 = vpop.f32.mrb[8].mxu0 }
 0x4ca   : > { %864 = vst.msk [vmem:[#allocation2] sm:$0xff] %vm756_vm2, %v858_v46  ;;  %v1616_v47 = vpop.f32.mrb[9].mxu0 }
 0x4cb   : > { %v861_v48 = vpop.f32.mrb[10].mxu0 }
 0x4cc   : > { %v1617_v49 = vpop.f32.mrb[11].mxu0 }
 0x53b   : > { %v972_v50 = vpop.f32.mrb[12].mxu0 }
 0x53c   : > { %979 = vrot.lane.b32.xlu1 %v972_v50, %s2128_s1  ;;  %v1628_v51 = vpop.f32.mrb[13].mxu0  ;;  %s2019_s1 = scalar_lea.vmem %s2018_s30, 256 }
 0x53d   : > { %v975_v52 = vpop.f32.mrb[14].mxu0  ;;  %p2021_p13 = scmp.lt.s32.totalorder %s2019_s1, %s2013_s20 }
 0x53e   : > { %v1629_v53 = vpop.f32.mrb[15].mxu0 }
 0x53f   : > { %p2022_p3 = por %p2021_p13, %p2020_p9 }
 0x541   : > { %p2023_p12 = pnand %p2022_p3, %p2016_p5 }
 0x543   : > { %v1088_v56 = vpop.f32.mrb[16].mxu0 }
 0x544   : > { %1095 = vrot.lane.b32.xlu0 %v1088_v56, %s2129_s21  ;;  %v1640_v57 = vpop.f32.mrb[17].mxu0 }
 0x545   : > { %v1091_v58 = vpop.f32.mrb[18].mxu0 }
 0x546   : > { %v1641_v59 = vpop.f32.mrb[19].mxu0 }
 0x54b   : > { %v1204_v60 = vpop.f32.mrb[20].mxu0 }
 0x54c   : > { %1211 = vrot.lane.b32.xlu1 %v1204_v60, %s2130_s10  ;;  %v1652_v61 = vpop.f32.mrb[21].mxu0 }
 0x54d   : > { %v1207_v62 = vpop.f32.mrb[22].mxu0 }
 0x54e   : > { %v1653_v63 = vpop.f32.mrb[23].mxu0 }
 0x5ae   : > { %v980_v1 = vpop.permute.xlu1 %979 }
 0x5af   : > { %983 = vst.msk [vmem:[#allocation2] sm:$0xff] %vm982_vm6, %v980_v1 }
 0x5b6   : > { %v1096_v2 = vpop.permute.xlu0 %1095 }
 0x5b7   : > { %1099 = vst.msk [vmem:[#allocation2] sm:$0xff] %vm1098_vm7, %v1096_v2 }
 0x5be   : > { %v1212_v0 = vpop.permute.xlu1 %1211 }
 0x5bf   : > { %1215 = vst.msk [vmem:[#allocation2] sm:$0xff] %vm1214_vm8, %v1212_v0 }
 0x5c6   : > { %v1216_v3 = vld [vmem:[#allocation2] sm:$0xff] }
 0x5c7   : > { %v1217_v4 = vpack.c.bf16 %v1216_v3, %v1216_v3 }
 0x5c9   : > { %1659 = vmatmul.mubr.msk.bf16.vlgmr.msra.gmra.mrb[20].mxu1 %vm579_vm1, %v1217_v4 }
 0x69c   : > { %v1271_v5 = vpop.f32.mrb[20].mxu1 }
 0x69d   : > { %v1272_v7 = vadd.f32 %v1271_v5, %v2557_v6  ;;  %v1660_v8 = vpop.f32.mrb[21].mxu1 }
 0x69e   : > { %v1274_v9 = vpop.f32.mrb[22].mxu1 }
 0x69f   : > { %v1661_v10 = vpop.f32.mrb[23].mxu1  ;;  %v1279_v11 = vsel %vm579_vm1, %v1272_v7, 0.0 }
 0x6a0   : > { %1280 = vadd.xlane.f32.xlu0 %v1279_v11 }
 0x72d   : > { %v1281_v12 = vpop.xlane.xlu0 %1280 }
 0x72e   : > { %v1283_v13 = vmul.f32 0.03125, %v1281_v12 }
 0x730   : > { %v1284_v14 = vsub.f32 %v1272_v7, %v1283_v13 }
 0x732   : > { %v1285_v15 = vmul.f32 %v1284_v14, %v1284_v14 }
 0x734   : > { %v1286_v16 = vsel %vm579_vm1, %v1285_v15, 0.0 }
 0x735   : > { %1287 = vadd.xlane.f32.xlu1 %v1286_v16 }
 0x7c2   : > { %v1288_v17 = vpop.xlane.xlu1 %1287 }
 0x7c3   : > { %v1289_v18 = vmul.f32 0.03125, %v1288_v17 }
 0x7c5   : > { %v1290_v19 = vadd.f32 1e-05, %v1289_v18 }
 0x7c7   : > { %1807 = vrsqrt.f32 %v1290_v19 }
 0x7d1   : > { %v1808_v6 = vpop.eup %1807 }
 0x7d2   : > { %v1292_v21 = vmul.f32 %v1808_v6, %v1284_v14 }
 0x7d4   : > { %v1299_v23 = vmul.f32 %v1546_v20, %v1292_v21 }
 0x7d6   : > { %v1306_v24 = vadd.f32 %v1547_v22, %v1299_v23 }
 0x7d8   : > { %1307 = vst.msk [vmem:[%s551_s22] sm:$0xff] %vm579_vm1, %v1306_v24 }
 0x7d9   : > { %2026 = shalt.err (!%p2023_p12)
}
 0x7da   : > { %s2027_s28 = scalar_lea.hbm %s2656_s19, 128  ;;  %s2031_s9 = scalar_lea.hbm %s2789_s4, 256 }
 0x7db   : > { %p2028_p6 = scmp.ne.s32.totalorder %s2656_s19, %s2027_s28  ;;  %p2032_p0 = scmp.lt.u32.totalorder %s2656_s19, %s2789_s4 }
 0x7dc   : > { %p2033_p1 = scmp.lt.u32.totalorder %s2031_s9, %s2027_s28  ;;  %p2035_p4 = scmp.lt.u32.totalorder %s2027_s28, %s2656_s19 }
 0x7dd   : > { %p2029_p11 = pnand %p2028_p6, %p2790_p8 }
 0x7de   : > { %p2034_p2 = por %p2033_p1, %p2032_p0 }
 0x7df   : > { %p2030_p7 = pneg %p2029_p11 }
 0x7e0   : > { %p2036_p10 = por %p2035_p4, %p2034_p2 }
 0x7e2   : > { %p2037_p5 = pnand %p2036_p10, %p2030_p7 }
 0x7e4   : > { %2040 = shalt.err (!%p2037_p5)
}
 0x7e5   : > { %1682 = dma.vmem_to_hbm [thread:$0]  (%p2790_p8), %s2658_s16, 128, %s2656_s19, %s1309_s12  }
 0x7e6 PF: > { %s2791_s26 = sld [smem:[#allocation22_spill]]  ;;  %s2792_s11 = sld [smem:[#allocation26_spill]] }
 0x7e7   : > { %p2794_p13 = scmp.ge.s32.totalorder %s2111_s18, 2 }
 0x7ec   : > { %s1335_s5 = sand.u32 1, %s2791_s26   ;;  %p2793_p9 = scmp.ne.s32.totalorder %s2792_s11, 0 }
 0x7ed   : > { %s1336_s15 = scalar_lea.sflag [#allocation5], %s1335_s5 }
 0x7ee   : > { %p1708_p3 = pnand %p2794_p13, %p2793_p9 }
 0x7f0   : > { %2086 = dma.done.wait (!%p1708_p3), %s1336_s15, 128  }
 0x7f1   : > { %2088 = vsyncadd (!%p1708_p3), %s1336_s15, 4294967168  ;;  %s33_s18 = sadd.s32 1, %s2111_s18   ;;  %s2795_s8 = sld [smem:[#allocation23_spill]] }
 0x7f2   : > { %p30_p12 = scmp.ge.s32.totalorder %s33_s18, 4   ;;  %s2796_s15 = sld [smem:[#allocation28_spill]] }
 0x7f3   : > { %s2797_s29 = sld [smem:[#allocation27_spill]]  ;;  %s2798_s13 = smov %s2095_s14 }
 0x7f4   : > { %s2800_s16 = smov %s2107_s17  ;;  %32 = sbr.rel (!%p30_p12) target bundleno = 19 (0x13), region = 154 }
 0x7f7   : > { %s2799_s14 = smov %s2795_s8 }
 0x7f9   : > { %s2801_s17 = smov %s2797_s29 }
 0x7fb   :  { %1341 = vsyncpa [#allocation4], 1 }
 0x7fc   :  { %1343 = vsyncpa [#allocation4 + $0x1], 1 }
 0x7fd   :  { %1344 = vsyncpa [#allocation7], 1 }
 0x7fe   :  { %1346 = vsyncpa [#allocation7 + $0x1], 1 }
 0x7ff   :  { %1347 = vsyncpa [#allocation10], 1 }
 0x800   :  { %1349 = vsyncpa [#allocation10 + $0x1], 1 }
 0x801   :  { %1350 = vsyncpa [#allocation13], 1 }
 0x802   :  { %1351 = vsyncpa [#allocation5], 1 }
 0x803   :  { %1353 = vsyncpa [#allocation5 + $0x1], 1 }

</bundles_post_ra>
